<compile_context>
chip_gen: v5e
topology: v5e:2x2
jax: 0.10.0
libtpu: 0.0.40
codegen_flags: <defaults>
</compile_context>

<pallas_src>
import jax
import jax.numpy as jnp
from jax.experimental import pallas as pl
from jax.experimental.pallas import tpu as pltpu

CLS_ID = 101
SEP_ID = 102
PAD_ID = 0
MAX_LENGTH = 77
VOCAB_SIZE = 30522
LANES = 128


def _round_up(x, m):
    return ((x + m - 1) // m) * m


def _pick_batch_tile(B, in_cols, out_cols, batch_tile):
    """Sublane-aligned batch tile sized against a conservative VMEM budget."""
    if B <= 8:
        return B                                    # full-extent block
    # Double-buffered per-row VMEM bytes: ids window (lane-pads to >=128) +
    # lengths block ((tb, 1) int32 lane-pads to 128) + lane-dense output,
    # plus the (non-double-buffered) widen scratch.
    per_row = (max(in_cols, LANES) + LANES + out_cols) * 4 * 2 + out_cols * 4
    vmem_rows = (24 * 1024 * 1024) // per_row       # headroom under 32 MiB scoped
    tb = min(batch_tile, vmem_rows)
    # >= 2 grid steps for larger batches so the "parallel" batch axis can shard
    # across both TensorCores on v7x.
    tb = min(tb, _round_up((B + 1) // 2, 8))
    tb = max(8, (tb // 8) * 8)
    return tb


def _pack(ids_wide, len_ref, out_ref, max_length):
    """Assemble [CLS] + truncated tokens + [SEP] + PAD, lane-dense (VPU/XLU)."""
    TB, OUTW = out_ref.shape                        # OUTW is a multiple of 128
    # Output column j (1 <= j <= n) must hold raw id j-1 -> rotate right by one
    # lane (XLU).  Column 0 receives wrap-around junk, overwritten by CLS.
    shifted = pltpu.roll(ids_wide, shift=1, axis=1)
    n = jnp.minimum(len_ref[...], max_length - 2)   # [TB, 1] kept content tokens
    col = jax.lax.broadcasted_iota(jnp.int32, (TB, OUTW), 1)
    out = jnp.where(
        col == 0, CLS_ID,
        jnp.where(col <= n, shifted,
                  jnp.where(col == n + 1, SEP_ID, PAD_ID)))
    out_ref[...] = out.astype(out_ref.dtype)


def bert_tokenizer_forward(raw_ids, lengths, max_length=MAX_LENGTH,
                           batch_tile=4096, lane_padded_output=False):
    """Pallas equivalent of BERTTokenizer.forward on pre-numericalized ids.

    raw_ids : [B, Lraw] int32 raw content-token ids (no special tokens)
    lengths : [B]       int32 number of valid raw tokens per row
              (if lengths[i] > Lraw, PAD_ID-valued ids appear as "content",
               exactly like the plain-JAX reference)
    returns : [B, max_length] int32 padded input_ids
              (or the lane-dense [B, 128*ceil(max_length/128)] tensor, whose
               trailing columns are PAD, if lane_padded_output=True)
    """
    B, Lraw = raw_ids.shape
    raw_ids = raw_ids.astype(jnp.int32)
    lengths2d = lengths.reshape(B, 1).astype(jnp.int32)

    out_cols = LANES * pl.cdiv(max_length, LANES)   # lane-dense output width
    needs_widen = Lraw < out_cols
    in_cols = Lraw if needs_widen else out_cols     # in-place lane window if wide

    tb = _pick_batch_tile(B, in_cols, out_cols, batch_tile)
    grid = (pl.cdiv(B, tb),)

    if needs_widen:
        def kernel(ids_ref, len_ref, out_ref, wide_ref):
            # Widen narrow input to a full lane tile inside VMEM (no HBM pad).
            wide_ref[...] = jnp.full(wide_ref.shape, PAD_ID, wide_ref.dtype)
            wide_ref[:, :in_cols] = ids_ref[...]    # masked sub-lane store
            _pack(wide_ref[...], len_ref, out_ref, max_length)
        scratch_shapes = [pltpu.VMEM((tb, out_cols), jnp.int32)]
    else:
        def kernel(ids_ref, len_ref, out_ref):
            _pack(ids_ref[...], len_ref, out_ref, max_length)
        scratch_shapes = []

    bytes_accessed = B * (in_cols + 1 + out_cols) * 4

    out_wide = pl.pallas_call(
        kernel,
        out_shape=jax.ShapeDtypeStruct((B, out_cols), jnp.int32),
        grid=grid,
        in_specs=[
            pl.BlockSpec((tb, in_cols), lambda i: (i, 0)),
            pl.BlockSpec((tb, 1), lambda i: (i, 0)),
        ],
        out_specs=pl.BlockSpec((tb, out_cols), lambda i: (i, 0)),
        scratch_shapes=scratch_shapes,
        compiler_params=pltpu.CompilerParams(
            dimension_semantics=("parallel",)),
        cost_estimate=pl.CostEstimate(
            flops=0, transcendentals=0, bytes_accessed=bytes_accessed),
    )(raw_ids, lengths2d)

    if lane_padded_output:
        return out_wide
    return out_wide[:, :max_length]


def _ref(raw_ids, lengths, max_length=MAX_LENGTH):
    """Plain-JAX reference."""
    Lr = raw_ids.shape[1]
    padded = jnp.pad(raw_ids, ((0, 0), (0, max(0, max_length - Lr))))[:, :max_length]
    n = jnp.minimum(lengths, max_length - 2)[:, None]
    col = jnp.arange(max_length)[None, :]
    shifted = jnp.roll(padded, 1, axis=-1)
    return jnp.where(col == 0, CLS_ID,
           jnp.where(col <= n, shifted,
           jnp.where(col == n + 1, SEP_ID, PAD_ID))).astype(jnp.int32)


if __name__ == "__main__":
    key = jax.random.PRNGKey(0)
    k1, k2, k3, k4, k5, k6 = jax.random.split(key, 6)

    # Case 1: small batch, Lraw=80 (>= max_length, < 128): in-kernel widen path,
    # one short sequence (padded) and one over-long sequence (truncated).
    B1, L1 = 2, 80
    ids1 = jax.random.randint(k1, (B1, L1), 1000, VOCAB_SIZE, dtype=jnp.int32)
    len1 = jnp.array([5, 100], dtype=jnp.int32)
    out1 = jax.block_until_ready(bert_tokenizer_forward(ids1, len1))

    # Case 2: B=16, Lraw=200 (>= 128): in-place lane-aligned window, batch
    # tiling exercised with tb=8 -> grid=(2,).
    B2, L2 = 16, 200
    ids2 = jax.random.randint(k2, (B2, L2), 1000, VOCAB_SIZE, dtype=jnp.int32)
    len2 = jax.random.randint(k3, (B2,), 0, 120, dtype=jnp.int32)
    out2 = jax.block_until_ready(bert_tokenizer_forward(ids2, len2, batch_tile=8))

    # Case 3: very short raw buffer (Lraw < max_length), lengths > Lraw.
    B3, L3 = 4, 16
    ids3 = jax.random.randint(k4, (B3, L3), 1000, VOCAB_SIZE, dtype=jnp.int32)
    len3 = jnp.array([0, 3, 16, 30], dtype=jnp.int32)
    out3 = jax.block_until_ready(bert_tokenizer_forward(ids3, len3))

    # Case 4: B=20 with tb=16 -> grid=(2,) and B % tb != 0 (ragged last block);
    # also checks the lane-dense (padded) output variant.
    B4, L4 = 20, 128
    ids4 = jax.random.randint(k5, (B4, L4), 1000, VOCAB_SIZE, dtype=jnp.int32)
    len4 = jax.random.randint(k6, (B4,), 0, 120, dtype=jnp.int32)
    out4 = jax.block_until_ready(bert_tokenizer_forward(ids4, len4))
    out4_wide = jax.block_until_ready(
        bert_tokenizer_forward(ids4, len4, lane_padded_output=True))

    exp1, exp2 = _ref(ids1, len1), _ref(ids2, len2)
    exp3, exp4 = _ref(ids3, len3), _ref(ids4, len4)

    assert out1.shape == (B1, MAX_LENGTH) and out1.dtype == jnp.int32
    assert bool(jnp.all(out1 == exp1)), "case 1 mismatch"
    assert bool(jnp.all(out2 == exp2)), "case 2 mismatch"
    assert bool(jnp.all(out3 == exp3)), "case 3 mismatch"
    assert bool(jnp.all(out4 == exp4)), "case 4 mismatch"
    assert out4_wide.shape == (B4, 128)
    assert bool(jnp.all(out4_wide[:, :MAX_LENGTH] == exp4)), "case 4 (wide) mismatch"
    assert bool(jnp.all(out4_wide[:, MAX_LENGTH:] == PAD_ID)), "case 4 pad lanes"
    assert int(out1[0, 0]) == CLS_ID and int(out1[1, 0]) == CLS_ID
    assert int(out1[0, 6]) == SEP_ID               # 5 content tokens -> SEP at col 6
    assert int(out1[1, MAX_LENGTH - 1]) == SEP_ID  # truncated to 75 -> SEP at last col
    assert int(out3[0, 1]) == SEP_ID               # length 0 -> [CLS][SEP][PAD...]
    print("KERNEL_OK")
</pallas_src>

<mosaic_0001>
module attributes {stable_mosaic.version = 11 : i64} {
  func.func @kernel(%arg0: i32, %arg1: memref<2x80xi32, #tpu.memory_space<vmem>>, %arg2: memref<2x1xi32, #tpu.memory_space<vmem>>, %arg3: memref<2x128xi32, #tpu.memory_space<vmem>>, %arg4: memref<2x128xi32, #tpu.memory_space<vmem>>) attributes {dimension_semantics = [#tpu.dimension_semantics<parallel>], iteration_bounds = array<i64: 1>, scalar_prefetch = 0 : i64, scratch_operands = 1 : i64, tpu.core_type = #tpu.core_type<tc>, window_params = [{transform_indices = @transform_0, window_bounds = array<i64: 2, 80>}, {transform_indices = @transform_1, window_bounds = array<i64: 2, 1>}, {transform_indices = @transform_2, window_bounds = array<i64: 2, 128>}]} {
    %c0_i32 = arith.constant 0 : i32
    %0 = vector.broadcast %c0_i32 : i32 to vector<2x128xi32>
    %c0 = arith.constant 0 : index
    %c0_0 = arith.constant 0 : index
    %1 = vector.load %arg4[%c0, %c0_0] : memref<2x128xi32, #tpu.memory_space<vmem>>, vector<2x128xi32>
    tpu.vector_store %arg4[%c0, %c0_0], %0 {strides = array<i32>} : memref<2x128xi32, #tpu.memory_space<vmem>>, vector<2x128xi32>,
    %c0_1 = arith.constant 0 : index
    %c0_2 = arith.constant 0 : index
    %2 = vector.load %arg1[%c0_1, %c0_2] : memref<2x80xi32, #tpu.memory_space<vmem>>, vector<2x80xi32>
    %c0_3 = arith.constant 0 : index
    %c0_4 = arith.constant 0 : index
    %3 = vector.load %arg4[%c0_3, %c0_4] : memref<2x128xi32, #tpu.memory_space<vmem>>, vector<2x80xi32>
    tpu.vector_store %arg4[%c0_3, %c0_4], %2 {strides = array<i32>} : memref<2x128xi32, #tpu.memory_space<vmem>>, vector<2x80xi32>,
    %c0_5 = arith.constant 0 : index
    %c0_6 = arith.constant 0 : index
    %4 = vector.load %arg4[%c0_5, %c0_6] : memref<2x128xi32, #tpu.memory_space<vmem>>, vector<2x128xi32>
    %c1_i32 = arith.constant 1 : i32
    %5 = tpu.dynamic_rotate %4 by %c1_i32 dim 1 : vector<2x128xi32>, i32 -> vector<2x128xi32>
    %c0_7 = arith.constant 0 : index
    %c0_8 = arith.constant 0 : index
    %6 = vector.load %arg2[%c0_7, %c0_8] : memref<2x1xi32, #tpu.memory_space<vmem>>, vector<2x1xi32>
    %c75_i32 = arith.constant 75 : i32
    %7 = vector.broadcast %c75_i32 : i32 to vector<2x1xi32>
    %8 = arith.minsi %6, %7 : vector<2x1xi32>
    %9 = tpu.iota {dimensions = array<i32: 1>} : vector<2x128xi32>
    %c0_i32_9 = arith.constant 0 : i32
    %10 = vector.broadcast %c0_i32_9 : i32 to vector<2x128xi32>
    %11 = arith.cmpi eq, %9, %10 : vector<2x128xi32>
    %12 = vector.broadcast %8 : vector<2x1xi32> to vector<2x128xi32>
    %13 = arith.cmpi sle, %9, %12 : vector<2x128xi32>
    %c1_i32_10 = arith.constant 1 : i32
    %14 = vector.broadcast %c1_i32_10 : i32 to vector<2x1xi32>
    %15 = arith.addi %8, %14 : vector<2x1xi32>
    %16 = vector.broadcast %15 : vector<2x1xi32> to vector<2x128xi32>
    %17 = arith.cmpi eq, %9, %16 : vector<2x128xi32>
    %c102_i32 = arith.constant 102 : i32
    %c0_i32_11 = arith.constant 0 : i32
    %18 = vector.broadcast %c102_i32 : i32 to vector<2x128xi32>
    %19 = vector.broadcast %c0_i32_11 : i32 to vector<2x128xi32>
    %20 = arith.select %17, %18, %19 : vector<2x128xi1>, vector<2x128xi32>
    %21 = arith.select %13, %5, %20 : vector<2x128xi1>, vector<2x128xi32>
    %c101_i32 = arith.constant 101 : i32
    %22 = vector.broadcast %c101_i32 : i32 to vector<2x128xi32>
    %23 = arith.select %11, %22, %21 : vector<2x128xi1>, vector<2x128xi32>
    %c0_12 = arith.constant 0 : index
    %c0_13 = arith.constant 0 : index
    %24 = vector.load %arg3[%c0_12, %c0_13] : memref<2x128xi32, #tpu.memory_space<vmem>>, vector<2x128xi32>
    tpu.vector_store %arg3[%c0_12, %c0_13], %23 {strides = array<i32>} : memref<2x128xi32, #tpu.memory_space<vmem>>, vector<2x128xi32>,
    return
  }
  func.func @transform_0(%arg0: i32) -> (i32, i32) {
    %c0_i32 = arith.constant 0 : i32
    %c0_i32_0 = arith.constant 0 : i32
    return %arg0, %c0_i32 : i32, i32
  }
  func.func @transform_1(%arg0: i32) -> (i32, i32) {
    %c0_i32 = arith.constant 0 : i32
    %c0_i32_0 = arith.constant 0 : i32
    return %arg0, %c0_i32 : i32, i32
  }
  func.func @transform_2(%arg0: i32) -> (i32, i32) {
    %c0_i32 = arith.constant 0 : i32
    %c0_i32_0 = arith.constant 0 : i32
    return %arg0, %c0_i32 : i32, i32
  }
}

</mosaic_0001>

<bundles_post_ra>
// kernel: tpu_custom_call.1
= control target key start
LH: loop header
LB: loop body
LE: loop exit
PB: predicated region body
PF: predicated region fallthrough
CT: control target
= control target key end

     0   :  { %vm14_vm0 = vcmask 648192   ;;  %v84_v2 = vmov 0   ;;  %s111_s0 = inlined_call_operand.vmem [shape: s32[2,80], index: 0, kind: input, shape index: {}]   ;;  %s112_s1 = inlined_call_operand.vmem [shape: s32[2,1], index: 1, kind: input, shape index: {}]   ;;  %s113_s2 = inlined_call_operand.hbm [shape: s32[2,128], index: 2, kind: output, shape index: {}]  }
   0x1   :  { %v13_v0 = vld [vmem:[%s111_s0] sm:$0x3]  ;;  %57 = vset.pattern.permute.xlu0 %v84_v2  ;;  %12 = vst [vmem:[#allocation2] sm:$0x3] %v84_v2 }
   0x2   :  { %v19_v1 = vld [vmem:[%s112_s1] sm:$0x3] }
   0x3   :  { %vm20_vm1 = vcmp.lt.s32.totalorder %v19_v1, 75 }
   0x4   :  { %7 = vsyncpa [#allocation4], 0  ;;  %15 = vst.msk [vmem:[#allocation2] sm:$0x3] %vm14_vm0, %v13_v0  ;;  %v21_v3 = vsel %vm20_vm1, %v19_v1, 75  ;;  %s85_s13 = smov 1   ;;  %v22_v6 = vlaneseq }
   0x5   :  { %v29_v4 = vadd.s32 1, %v21_v3  ;;  %s86_s0 = smov [#allocation3]   ;;  %s45_s16 = sshll.u32 %s113_s2, 4  ;;  %s46_s16 = int_to_ptr.hbm [resolvable:$true] %s45_s16 }
   0x6   :  { %v23_v8 = vand.u32 127, %v22_v6  ;;  %s43_s1 = sshll.u32 %s86_s0, 4  ;;  %s44_s1 = int_to_ptr.vmem [resolvable:$true] %s43_s1 }
   0x7   :  { %31 = vperm.xlu0 %57, %v29_v4  }
   0x8   :  { %vm24_vm3 = vcmp.eq.s32.totalorder %v23_v8, 0 }
   0xb   :  { %v16_v5 = vld [vmem:[#allocation2] sm:$0x3] }
   0xc   :  { %17 = vrot.lane.b32.xlu1 %v16_v5, %s85_s13 }
   0xf   :  { %26 = vperm.xlu0 %57, %v21_v3  }
  0x79   :  { %v32_v7 = vpop.permute.xlu0 %31 }
  0x7a   :  { %vm33_vm2 = vcmp.eq.s32.totalorder %v23_v8, %v32_v7 }
  0x7b   :  { %v34_v11 = vsel %vm33_vm2, 102, %v84_v2 }
  0x7e   :  { %v18_v9 = vpop.permute.xlu1 %17 }
  0x81   :  { %v27_v10 = vpop.permute.xlu0 %26 }
  0x82   :  { %vm28_vm4 = vcmp.le.s32.totalorder %v23_v8, %v27_v10 }
  0x83   :  { %v35_v12 = vsel %vm28_vm4, %v18_v9, %v34_v11 }
  0x84   :  { %v36_v13 = vsel %vm24_vm3, 101, %v35_v12 }
  0x85   :  { %37 = vst [vmem:[#allocation3] sm:$0x3] %v36_v13 }
  0x86   :  { %48 = dma.vmem_to_hbm [thread:$0]  %s44_s1, 32, %s46_s16, [#allocation4]  }
  0x87   :  { %82 = dma.done.wait [#allocation4], 32  }
  0x88   :  { %83 = vsyncadd [#allocation4], 4294967264 }
  0x89   :  { %53 = vsyncpa [#allocation4], 1 }

</bundles_post_ra>
